<compile_context>
chip_gen: v5e
topology: v5e:2x2
jax: 0.10.0
libtpu: 0.0.40
codegen_flags: <defaults>
</compile_context>

<pallas_src>
import jax
import jax.numpy as jnp
from jax.experimental import pallas as pl
from jax.experimental.pallas import tpu as pltpu


_X_BLOCK_BUDGET = 12 * 1024 * 1024   # bytes for one pipelined x block (Pallas double-buffers it)
_VMEM_LIMIT = 48 * 1024 * 1024       # fits v5e/v6e (128 MiB physical) and v7x (64 MiB physical)
_MAX_B_BLK = 8                       # max batch elements folded into one grid step


def _round_up(x, m):
    return ((x + m - 1) // m) * m


def _largest_divisor_leq(n, cap):
    cap = max(1, min(n, cap))
    best = 1
    for d in range(1, cap + 1):
        if n % d == 0:
            best = d
    return best


def _pick_hw_tile(hw_len, c_block, esize, budget):
    """Largest 128-multiple tile dividing hw_len whose (c_block, tile) x slab fits the budget."""
    for t in (4096, 2048, 1024, 512, 256, 128):
        if hw_len % t == 0 and c_block * t * esize <= budget:
            return t
    return None


def _conv1x1_single_k_kernel(w_ref, x_ref, o_ref):
    # w_ref: (N, C) resident; x_ref: (b_blk, C, t_hw); o_ref: (b_blk, N, t_hw) f32.
    # Whole contraction in one step -> write the output directly, no scratch accumulator.
    w = w_ref[...]
    for b in range(x_ref.shape[0]):          # b_blk is small and static -> unrolled
        o_ref[b] = jnp.dot(w, x_ref[b],
                           preferred_element_type=jnp.float32).astype(o_ref.dtype)


def _conv1x1_multi_k_kernel(w_ref, x_ref, o_ref):
    # Rare path (very large C): reduce over C tiles, accumulating directly into the
    # f32 output block (resident across k because its index_map ignores k).
    k = pl.program_id(2)

    @pl.when(k == 0)
    def _():
        o_ref[...] = jnp.zeros_like(o_ref)

    o_ref[0] += jnp.dot(w_ref[...], x_ref[0],
                        preferred_element_type=jnp.float32)


def localization_net_base(feature, weight, normalize_weights=False):
    """feature: (B, C, H, W); weight: (N, C) 1x1 conv weight (no bias). Returns (B, N, H, W) f32."""
    B, C, H, W = feature.shape
    N, Cw = weight.shape
    assert Cw == C, "Feature dim is not right. Error in LocalizationNetBase."
    HW = H * W

    # Weight prep: a tiny (N, C) parameter op, done once in plain JAX exactly as PyTorch does
    # (torch.nn.functional.normalize with p=2, dim=1, eps=1e-12).
    w = weight.astype(jnp.float32)
    if normalize_weights:
        norm = jnp.sqrt(jnp.sum(w * w, axis=1, keepdims=True))
        w = w / jnp.maximum(norm, 1e-12)
    # Feed the MXU with the activation dtype (avoids a full-HBM astype pass on x; bf16 is native).
    w = w.astype(feature.dtype)

    x = feature.reshape(B, C, HW)            # contiguous reshape: no data movement
    esize = jnp.dtype(feature.dtype).itemsize

    # ---- contraction (C) tiling: prefer the whole C as one block (no pad, no k grid axis) ----
    single_k = C * 128 * esize <= _X_BLOCK_BUDGET
    if single_k:
        t_c = C
        c_tiles = 1
    else:
        t_c = None
        for t in (4096, 2048, 1024, 512, 256, 128):
            if C % t == 0 and t * 128 * esize <= _X_BLOCK_BUDGET:
                t_c = t
                break
        if t_c is None:
            # Last resort: zero-pad C (keeps the reduction exact) so it tiles by 128.
            c_pad = _round_up(C, 128)
            t_c = 128
            for t in (4096, 2048, 1024, 512, 256):
                if c_pad % t == 0 and t * 128 * esize <= _X_BLOCK_BUDGET:
                    t_c = t
                    break
            x = jnp.pad(x, ((0, 0), (0, c_pad - C), (0, 0)))
            w = jnp.pad(w, ((0, 0), (0, c_pad - C)))
        c_tiles = x.shape[1] // t_c

    # ---- spatial (HW) tiling: avoid padding whenever a full-HW or 128-multiple block works ----
    cands = []
    if t_c * HW * esize <= _X_BLOCK_BUDGET:
        cands.append(HW)                      # whole spatial axis in one block -> no pad needed
    if HW % 128 == 0:
        t = _pick_hw_tile(HW, t_c, esize, _X_BLOCK_BUDGET)
        if t is not None:
            cands.append(t)
    if cands:
        t_hw = max(cands)
        hw_store = HW
    else:
        hw_store = _round_up(HW, 128)         # rare fallback: pad HW up to a lane multiple
        t_hw = _pick_hw_tile(hw_store, t_c, esize, _X_BLOCK_BUDGET) or 128
        x = jnp.pad(x, ((0, 0), (0, 0), (0, hw_store - HW)))
    hw_tiles = hw_store // t_hw

    # ---- batch folding: amortize per-grid-step overhead for small spatial extents, while
    #      keeping >= 2 parallel grid steps so both v7x TensorCores get work when B >= 2.
    b_blk = 1
    if single_k and hw_tiles == 1 and B > 1:
        per_b = t_c * t_hw * esize
        cap = min(_MAX_B_BLK, max(1, _X_BLOCK_BUDGET // per_b), max(1, B // 2))
        b_blk = _largest_divisor_leq(B, cap)
    grid_b = B // b_blk

    if single_k:
        grid = (grid_b, hw_tiles)
        w_spec = pl.BlockSpec((N, t_c), lambda bi, j: (0, 0))            # weight stays resident
        x_spec = pl.BlockSpec((b_blk, t_c, t_hw), lambda bi, j: (bi, 0, j))
        o_spec = pl.BlockSpec((b_blk, N, t_hw), lambda bi, j: (bi, 0, j))
        kernel = _conv1x1_single_k_kernel
        dim_sem = ("parallel", "parallel")
    else:
        grid = (grid_b, hw_tiles, c_tiles)
        w_spec = pl.BlockSpec((N, t_c), lambda bi, j, k: (0, k))
        x_spec = pl.BlockSpec((1, t_c, t_hw), lambda bi, j, k: (bi, k, j))
        o_spec = pl.BlockSpec((1, N, t_hw), lambda bi, j, k: (bi, 0, j))
        kernel = _conv1x1_multi_k_kernel
        dim_sem = ("parallel", "parallel", "arbitrary")

    cost = pl.CostEstimate(
        flops=2 * B * N * C * HW,
        transcendentals=0,
        bytes_accessed=int(x.size) * esize
                       + int(w.size) * jnp.dtype(w.dtype).itemsize
                       + B * N * hw_store * 4,
    )

    out = pl.pallas_call(
        kernel,
        out_shape=jax.ShapeDtypeStruct((B, N, hw_store), jnp.float32),
        grid_spec=pltpu.PrefetchScalarGridSpec(
            num_scalar_prefetch=0,
            grid=grid,
            in_specs=[w_spec, x_spec],
            out_specs=o_spec,
        ),
        compiler_params=pltpu.CompilerParams(
            dimension_semantics=dim_sem,
            vmem_limit_bytes=_VMEM_LIMIT,
        ),
        cost_estimate=cost,
    )(w, x)

    if hw_store != HW:
        out = out[:, :, :HW]
    return out.reshape(B, N, H, W)


if __name__ == "__main__":
    # Small shapes consistent with the module: feature B x C x H x W, 1x1 conv to num_base channels.
    B, C, H, W = 2, 256, 16, 16
    num_base = 8

    key = jax.random.PRNGKey(0)
    kx, kw = jax.random.split(key)
    feature = jax.random.normal(kx, (B, C, H, W), dtype=jnp.float32)
    # conv.weight.data.normal_(0, sqrt(2/C)); kernel_size=1 so weight is effectively (N, C).
    weight = (jnp.sqrt(2.0 / C)
              * jax.random.normal(kw, (num_base, C), dtype=jnp.float32))

    # Path 1: normalize_weights=False (plain 1x1 conv).
    out = jax.block_until_ready(
        localization_net_base(feature, weight, normalize_weights=False))
    ref = jnp.einsum("nc,bchw->bnhw", weight, feature,
                     precision=jax.lax.Precision.HIGHEST)
    assert out.shape == (B, num_base, H, W)
    assert jnp.allclose(out, ref, atol=5e-2, rtol=5e-2), \
        float(jnp.max(jnp.abs(out - ref)))

    # Path 2: normalize_weights=True (L2-normalized weights + bmm).
    out_n = jax.block_until_ready(
        localization_net_base(feature, weight, normalize_weights=True))
    wn = weight / jnp.maximum(
        jnp.linalg.norm(weight, axis=1, keepdims=True), 1e-12)
    ref_n = jnp.einsum("nc,bchw->bnhw", wn, feature,
                       precision=jax.lax.Precision.HIGHEST)
    assert out_n.shape == (B, num_base, H, W)
    assert jnp.allclose(out_n, ref_n, atol=5e-2, rtol=5e-2), \
        float(jnp.max(jnp.abs(out_n - ref_n)))

    print("KERNEL_OK")
</pallas_src>

<mosaic_0001>
module attributes {stable_mosaic.version = 11 : i64} {
  func.func @_conv1x1_single_k_kernel(%arg0: i32, %arg1: i32, %arg2: memref<8x256xf32, #tpu.memory_space<vmem>>, %arg3: memref<1x256x256xf32, #tpu.memory_space<vmem>>, %arg4: memref<1x8x256xf32, #tpu.memory_space<vmem>>) attributes {dimension_semantics = [#tpu.dimension_semantics<parallel>, #tpu.dimension_semantics<parallel>], iteration_bounds = array<i64: 2, 1>, scalar_prefetch = 0 : i64, scratch_operands = 0 : i64, tpu.core_type = #tpu.core_type<tc>, window_params = [{pipeline_mode = #tpu.pipeline_mode<synchronous>, transform_indices = @transform_0, window_bounds = array<i64: 8, 256>}, {transform_indices = @transform_1, window_bounds = array<i64: 1, 256, 256>}, {transform_indices = @transform_2, window_bounds = array<i64: 1, 8, 256>}]} {
    %c0 = arith.constant 0 : index
    %c0_0 = arith.constant 0 : index
    %0 = vector.load %arg2[%c0, %c0_0] : memref<8x256xf32, #tpu.memory_space<vmem>>, vector<8x256xf32>
    %c0_1 = arith.constant 0 : index
    %c0_2 = arith.constant 0 : index
    %c0_3 = arith.constant 0 : index
    %1 = vector.load %arg3[%c0_1, %c0_2, %c0_3] : memref<1x256x256xf32, #tpu.memory_space<vmem>>, vector<1x256x256xf32>
    %2 = vector.shape_cast %1 : vector<1x256x256xf32> to vector<256x256xf32>
    %cst = arith.constant dense<0.000000e+00> : vector<8x256xf32>
    %3 = tpu.matmul %0, %2, %cst {dimension_numbers = #tpu.dot_dimension_numbers<[1], [0], [0], [1], [0, 0, 1, 1], [], []>} : vector<8x256xf32>, vector<256x256xf32>, vector<8x256xf32> -> vector<8x256xf32>
    %c0_4 = arith.constant 0 : index
    %c0_5 = arith.constant 0 : index
    %c0_6 = arith.constant 0 : index
    %4 = vector.load %arg4[%c0_4, %c0_5, %c0_6] : memref<1x8x256xf32, #tpu.memory_space<vmem>>, vector<1x8x256xf32>
    %5 = vector.shape_cast %4 : vector<1x8x256xf32> to vector<8x256xf32>
    %6 = vector.shape_cast %3 : vector<8x256xf32> to vector<1x8x256xf32>
    tpu.vector_store %arg4[%c0_4, %c0_5, %c0_6], %6 {strides = array<i32>} : memref<1x8x256xf32, #tpu.memory_space<vmem>>, vector<1x8x256xf32>,
    return
  }
  func.func @transform_0(%arg0: i32, %arg1: i32) -> (i32, i32) {
    %c0_i32 = arith.constant 0 : i32
    %c0_i32_0 = arith.constant 0 : i32
    %c0_i32_1 = arith.constant 0 : i32
    return %c0_i32, %c0_i32_0 : i32, i32
  }
  func.func @transform_1(%arg0: i32, %arg1: i32) -> (i32, i32, i32) {
    %c0_i32 = arith.constant 0 : i32
    %c0_i32_0 = arith.constant 0 : i32
    return %arg0, %c0_i32, %arg1 : i32, i32, i32
  }
  func.func @transform_2(%arg0: i32, %arg1: i32) -> (i32, i32, i32) {
    %c0_i32 = arith.constant 0 : i32
    %c0_i32_0 = arith.constant 0 : i32
    return %arg0, %c0_i32, %arg1 : i32, i32, i32
  }
}

</mosaic_0001>

<bundles_post_ra>
// kernel: tpu_custom_call.1
= control target key start
LH: loop header
LB: loop body
LE: loop exit
PB: predicated region body
PF: predicated region fallthrough
CT: control target
= control target key end

     0   :  { %7 = vsyncpa [#allocation3], 0  ;;  %s940_s0 = inlined_call_operand.hbm [shape: f32[8,256], index: 0, kind: input, shape index: {}]   ;;  %s941_s1 = inlined_call_operand.hbm [shape: f32[2,256,256], index: 1, kind: input, shape index: {}]   ;;  %s942_s2 = inlined_call_operand.hbm [shape: f32[2,8,256], index: 2, kind: output, shape index: {}]  }
   0x1   :  { %8 = vsyncpa [#allocation6], 0 }
   0x2   :  { %10 = vsyncpa [#allocation6 + $0x1], 0 }
   0x3   :  { %11 = vsyncpa [#allocation4], 0 }
   0x4   :  { %13 = vsyncpa [#allocation4 + $0x1], 0  ;;  %s722_s9 = smov 0   ;;  %s724_s10 = smov 0  }
   0x5   :  { %s726_s11 = smov 0   ;;  %s728_s12 = smov 0  }
   0x6   :  { %s730_s13 = smov 0   ;;  %s732_s14 = smov 0  }
   0x7 LB: > { %s462_s15 = sadd.s32 4294967295, %s702_s14   ;;  %s463_s16 = sadd.s32 4294967294, %s702_s14   ;;  %s702_s14 = sphi %s732_s14, %s19_s14   ;;  %s698_s13 = sphi %s730_s13, %s954_s13   ;;  %s694_s12 = sphi %s728_s12, %s953_s12   ;;  %s690_s11 = sphi %s726_s11, %s952_s11   ;;  %s686_s10 = sphi %s724_s10, %s951_s10   ;;  %s682_s9 = sphi %s722_s9, %s950_s9  }
   0x8   : > { %s61_s17 = sadd.s32 1, %s690_s11  ;;  %p68_p0 = scmp.ne.s32.totalorder %s690_s11, %s686_s10 }
   0x9   : > { %p69_p1 = scmp.eq.s32.totalorder %s702_s14, 0  ;;  %p74_p2 = scmp.ne.s32.totalorder %s686_s10, %s682_s9 }
   0xa   : > { %p760_p3 = scmp.eq.s32.totalorder %s462_s15, 0  ;;  %p100_p4 = scmp.eq.s32.totalorder %s462_s15, 1 }
   0xb   : > { %p764_p5 = por %p69_p1, %p68_p0  ;;  %p106_p6 = scmp.eq.s32.totalorder %s463_s16, 1 }
   0xc   : > { %p770_p7 = por %p760_p3, %p74_p2  ;;  %p774_p8 = por %p100_p4, %p68_p0 }
   0xd   : > { %p778_p9 = por %p106_p6, %p74_p2  ;;  %p464_p10 = scmp.ge.s32.totalorder %s702_s14, 1 }
   0xe   : > { %p113_p11 = scmp.lt.s32.totalorder %s702_s14, 3  ;;  %s125_s25 = sshll.u32 %s940_s0, 4  ;;  %s126_s25 = int_to_ptr.hbm [resolvable:$true] %s125_s25 }
   0xf   : > { %s704_s27 = smov [#allocation2]   ;;  %p466_p13 = scmp.ge.s32.totalorder %s702_s14, 2 }
  0x10   : > { %p787_p12 = pnand %p464_p10, %p113_p11  ;;  %s127_s28 = sshll.u32 %s704_s27, 4  ;;  %s128_s28 = int_to_ptr.vmem [resolvable:$true] %s127_s28 }
  0x11   : > { %p502_p1 = scmp.lt.s32.totalorder %s702_s14, 2  ;;  %s31_s30 = sadd.s32 1, %s698_s13 }
  0x12   : > { %p489_p0 = pneg %p787_p12  ;;  %p33_p6 = scmp.ge.s32.totalorder %s31_s30, 2 }
  0x13   : > { %p799_p4 = pnand %p502_p1, %p764_p5  ;;  %s138_s3 = sand.u32 1, %s690_s11  }
  0x14   : > { %p490_p2 = pnand %p489_p0, %p760_p3  ;;  %s956_s30 = smov (%p33_p6, %s31_s30), 0 }
  0x15   : > { %s467_s4 = sshll.u32 %s138_s3, 9  ;;  %s56_s5 = ssub.s32 %s698_s13, %s956_s30 }
  0x16   : > { %492 = dma.hbm_to_vmem [thread:$0]  (!%p490_p2), %s126_s25, 256, %s128_s28, [#allocation3]  }
  0x17   : > { %p59_p10 = scmp.eq.s32.totalorder %s56_s5, 0  ;;  %s479_s6 = sshll.u32 %s698_s13, 9 }
  0x18   : > { %s149_s15 = scalar_lea.hbm %s941_s1, %s479_s6  ;;  %s142_s16 = scalar_lea.vmem [#allocation5], %s467_s4 }
  0x19   : > { %s152_s19 = sshll.u32 %s142_s16, 4  ;;  %s150_s24 = sshll.u32 %s149_s15, 4  ;;  %s153_s19 = int_to_ptr.vmem [resolvable:$true] %s152_s19  ;;  %s151_s24 = int_to_ptr.hbm [resolvable:$true] %s150_s24 }
  0x1a   : > { %s816_s23 = scalar_select %p59_p10, %s690_s11, %s61_s17  }
  0x1b   : > { %s139_s25 = scalar_lea.sflag [#allocation6], %s138_s3  ;;  %s705_s27 = smov 256  }
  0x1c   : > { %s706_s28 = smov 16   ;;  %164 = sbr.rel (%p787_p12) target bundleno = 208 (0xd0), region = 28 }
  0x1d   : > { %496 = dma.hbm_to_vmem [thread:$0]  (!%p799_p4), %s151_s24, 8192, %s153_s19, %s139_s25, %s705_s27, %s705_s27, %s706_s28  }
  0x21   : > { %669 = dma.done.wait (%p760_p3), [#allocation3], 256  }
  0x22   : > { %671 = vsyncadd (%p760_p3), [#allocation3], 4294967040  ;;  %s827_s17 = sand.u32 1, %s686_s10  }
  0x23   : > { %s472_s3 = sshll.u32 %s827_s17, 9  ;;  %s172_s4 = scalar_lea.sflag [#allocation6], %s827_s17 }
  0x24   : > { %s831_s5 = scalar_lea.vmem [#allocation5], %s472_s3 }
  0x25   : > { %673 = dma.done.wait (%p770_p7), %s172_s4, 8192  }
  0x26   : > { %675 = vsyncadd (%p770_p7), %s172_s4, 4294959104  ;;  %v232_v0 = vld [vmem:[%s831_s5 + $0xf8] sm:$0xff]  ;;  %v230_v2 = vld [vmem:[%s831_s5 + $0xe8] sm:$0xff]  ;;  %s473_s18 = sshll.u32 %s827_s17, 4  ;;  %s480_s20 = sshll.u32 %s694_s12, 4 }
  0x27   : > { %v264_v1 = vld [vmem:[%s831_s5 + $0x1f8] sm:$0xff]  ;;  %305 = vmatpush.msra.mxu2 %v232_v0  ;;  %v262_v3 = vld [vmem:[%s831_s5 + $0x1e8] sm:$0xff]  ;;  %v231_v6 = vld [vmem:[%s831_s5 + $0xf0] sm:$0xff]  ;;  %s361_s6 = scalar_lea.hbm %s942_s2, %s480_s20  ;;  %s196_s7 = scalar_lea.vmem [#allocation7], %s473_s18 }
  0x28   : > { %325 = vmatpush.msra.mxu3 %v264_v1  ;;  %v228_v4 = vld [vmem:[%s831_s5 + $0xd8] sm:$0xff]  ;;  %v263_v7 = vld [vmem:[%s831_s5 + $0x1f0] sm:$0xff]  ;;  %v229_v8 = vld [vmem:[%s831_s5 + $0xe0] sm:$0xff]  ;;  %265 = vmatpush.msra.mxu0 %v231_v6  ;;  %s363_s8 = sshll.u32 %s196_s7, 4  ;;  %s365_s15 = sshll.u32 %s361_s6, 4  ;;  %s364_s8 = int_to_ptr.vmem [resolvable:$true] %s363_s8  ;;  %s366_s15 = int_to_ptr.hbm [resolvable:$true] %s365_s15 }
  0x29   : > { %v260_v5 = vld [vmem:[%s831_s5 + $0x1d8] sm:$0xff]  ;;  %306 = vmatpush.msra.mxu2 %v230_v2  ;;  %v261_v9 = vld [vmem:[%s831_s5 + $0x1e0] sm:$0xff]  ;;  %285 = vmatpush.msra.mxu1 %v263_v7  ;;  %v226_v10 = vld [vmem:[%s831_s5 + $0xc8] sm:$0xff]  ;;  %s348_s16 = scalar_lea.sflag [#allocation4], %s827_s17  ;;  %s630_s12 = sshra.s32 %s366_s15, 4  ;;  %s631_s12 = int_to_ptr.hbm [resolvable:$true] %s630_s12 }
  0x2a   : > { %326 = vmatpush.msra.mxu3 %v262_v3  ;;  %v258_v11 = vld [vmem:[%s831_s5 + $0x1c8] sm:$0xff]  ;;  %v227_v12 = vld [vmem:[%s831_s5 + $0xd0] sm:$0xff]  ;;  %266 = vmatpush.msra.mxu0 %v229_v8  ;;  %v224_v14 = vld [vmem:[%s831_s5 + $0xb8] sm:$0xff]  ;;  %s632_s19 = scalar_lea.hbm %s631_s12, 16  ;;  %s636_s27 = scalar_lea.hbm %s942_s2, 32 }
  0x2b   : > { %307 = vmatpush.msra.mxu2 %v228_v4  ;;  %v259_v13 = vld [vmem:[%s831_s5 + $0x1d0] sm:$0xff]  ;;  %286 = vmatpush.msra.mxu1 %v261_v9  ;;  %v256_v15 = vld [vmem:[%s831_s5 + $0x1b8] sm:$0xff]  ;;  %v225_v16 = vld [vmem:[%s831_s5 + $0xc0] sm:$0xff]  ;;  %p633_p3 = scmp.ne.s32.totalorder %s631_s12, %s632_s19  ;;  %p637_p11 = scmp.lt.s32.totalorder %s631_s12, %s942_s2 }
  0x2c   : > { %327 = vmatpush.msra.mxu3 %v260_v5  ;;  %v257_v17 = vld [vmem:[%s831_s5 + $0x1c0] sm:$0xff]  ;;  %267 = vmatpush.msra.mxu0 %v227_v12  ;;  %v222_v18 = vld [vmem:[%s831_s5 + $0xa8] sm:$0xff]  ;;  %v223_v20 = vld [vmem:[%s831_s5 + $0xb0] sm:$0xff]  ;;  %p638_p12 = scmp.lt.s32.totalorder %s636_s27, %s632_s19 }
  0x2d   : > { %308 = vmatpush.msra.mxu2 %v226_v10  ;;  %287 = vmatpush.msra.mxu1 %v259_v13  ;;  %v254_v19 = vld [vmem:[%s831_s5 + $0x1a8] sm:$0xff]  ;;  %v255_v21 = vld [vmem:[%s831_s5 + $0x1b0] sm:$0xff]  ;;  %v220_v22 = vld [vmem:[%s831_s5 + $0x98] sm:$0xff]  ;;  %p634_p5 = pnand %p633_p3, %p774_p8 }
  0x2e   : > { %328 = vmatpush.msra.mxu3 %v258_v11  ;;  %268 = vmatpush.msra.mxu0 %v225_v16  ;;  %v252_v23 = vld [vmem:[%s831_s5 + $0x198] sm:$0xff]  ;;  %v221_v24 = vld [vmem:[%s831_s5 + $0xa0] sm:$0xff]  ;;  %v218_v26 = vld [vmem:[%s831_s5 + $0x88] sm:$0xff]  ;;  %p639_p0 = por %p638_p12, %p637_p11 }
  0x2f   : > { %309 = vmatpush.msra.mxu2 %v224_v14  ;;  %288 = vmatpush.msra.mxu1 %v257_v17  ;;  %v253_v25 = vld [vmem:[%s831_s5 + $0x1a0] sm:$0xff]  ;;  %v250_v27 = vld [vmem:[%s831_s5 + $0x188] sm:$0xff]  ;;  %v219_v28 = vld [vmem:[%s831_s5 + $0x90] sm:$0xff]  ;;  %p635_p7 = pneg %p634_p5 }
  0x30   : > { %329 = vmatpush.msra.mxu3 %v256_v15  ;;  %269 = vmatpush.msra.mxu0 %v223_v20  ;;  %v251_v29 = vld [vmem:[%s831_s5 + $0x190] sm:$0xff]  ;;  %v216_v30 = vld [vmem:[%s831_s5 + $0x78] sm:$0xff]  ;;  %v217_v32 = vld [vmem:[%s831_s5 + $0x80] sm:$0xff] }
  0x31   : > { %310 = vmatpush.msra.mxu2 %v222_v18  ;;  %289 = vmatpush.msra.mxu1 %v255_v21  ;;  %v248_v31 = vld [vmem:[%s831_s5 + $0x178] sm:$0xff]  ;;  %v249_v33 = vld [vmem:[%s831_s5 + $0x180] sm:$0xff]  ;;  %v214_v34 = vld [vmem:[%s831_s5 + $0x68] sm:$0xff]  ;;  %p640_p1 = pnand %p639_p0, %p635_p7 }
  0x32   : > { %330 = vmatpush.msra.mxu3 %v254_v19  ;;  %270 = vmatpush.msra.mxu0 %v221_v24  ;;  %v246_v35 = vld [vmem:[%s831_s5 + $0x168] sm:$0xff]  ;;  %v215_v36 = vld [vmem:[%s831_s5 + $0x70] sm:$0xff]  ;;  %v212_v38 = vld [vmem:[%s831_s5 + $0x58] sm:$0xff] }
  0x33   : > { %311 = vmatpush.msra.mxu2 %v220_v22  ;;  %290 = vmatpush.msra.mxu1 %v253_v25  ;;  %v247_v37 = vld [vmem:[%s831_s5 + $0x170] sm:$0xff]  ;;  %v244_v39 = vld [vmem:[%s831_s5 + $0x158] sm:$0xff]  ;;  %v213_v40 = vld [vmem:[%s831_s5 + $0x60] sm:$0xff] }
  0x34   : > { %331 = vmatpush.msra.mxu3 %v252_v23  ;;  %271 = vmatpush.msra.mxu0 %v219_v28  ;;  %v245_v41 = vld [vmem:[%s831_s5 + $0x160] sm:$0xff]  ;;  %v210_v42 = vld [vmem:[%s831_s5 + $0x48] sm:$0xff]  ;;  %v211_v44 = vld [vmem:[%s831_s5 + $0x50] sm:$0xff] }
  0x35   : > { %312 = vmatpush.msra.mxu2 %v218_v26  ;;  %291 = vmatpush.msra.mxu1 %v251_v29  ;;  %v242_v43 = vld [vmem:[%s831_s5 + $0x148] sm:$0xff]  ;;  %v243_v45 = vld [vmem:[%s831_s5 + $0x150] sm:$0xff]  ;;  %v208_v46 = vld [vmem:[%s831_s5 + $0x38] sm:$0xff] }
  0x36   : > { %332 = vmatpush.msra.mxu3 %v250_v27  ;;  %272 = vmatpush.msra.mxu0 %v217_v32  ;;  %v240_v47 = vld [vmem:[%s831_s5 + $0x138] sm:$0xff]  ;;  %v209_v48 = vld [vmem:[%s831_s5 + $0x40] sm:$0xff]  ;;  %v206_v50 = vld [vmem:[%s831_s5 + $0x28] sm:$0xff] }
  0x37   : > { %313 = vmatpush.msra.mxu2 %v216_v30  ;;  %292 = vmatpush.msra.mxu1 %v249_v33  ;;  %v241_v49 = vld [vmem:[%s831_s5 + $0x140] sm:$0xff]  ;;  %v238_v51 = vld [vmem:[%s831_s5 + $0x128] sm:$0xff]  ;;  %v207_v52 = vld [vmem:[%s831_s5 + $0x30] sm:$0xff] }
  0x38   : > { %333 = vmatpush.msra.mxu3 %v248_v31  ;;  %273 = vmatpush.msra.mxu0 %v215_v36  ;;  %v239_v53 = vld [vmem:[%s831_s5 + $0x130] sm:$0xff]  ;;  %v204_v54 = vld [vmem:[%s831_s5 + $0x18] sm:$0xff]  ;;  %v205_v56 = vld [vmem:[%s831_s5 + $0x20] sm:$0xff] }
  0x39   : > { %314 = vmatpush.msra.mxu2 %v214_v34  ;;  %293 = vmatpush.msra.mxu1 %v247_v37  ;;  %v236_v55 = vld [vmem:[%s831_s5 + $0x118] sm:$0xff]  ;;  %v237_v57 = vld [vmem:[%s831_s5 + $0x120] sm:$0xff]  ;;  %v202_v58 = vld [vmem:[%s831_s5 + $0x8] sm:$0xff] }
  0x3a   : > { %334 = vmatpush.msra.mxu3 %v246_v35  ;;  %274 = vmatpush.msra.mxu0 %v213_v40  ;;  %v234_v59 = vld [vmem:[%s831_s5 + $0x108] sm:$0xff]  ;;  %v199_v60 = vld [vmem:[#allocation2] sm:$0xff]  ;;  %v200_v61 = vld [vmem:[#allocation2 + $0x8] sm:$0xff] }
  0x3b   : > { %315 = vmatpush.msra.mxu2 %v212_v38  ;;  %294 = vmatpush.msra.mxu1 %v245_v41  ;;  %v203_v62 = vld [vmem:[%s831_s5 + $0x10] sm:$0xff]  ;;  %v201_v0 = vld [vmem:[%s831_s5] sm:$0xff] }
  0x3c   : > { %335 = vmatpush.msra.mxu3 %v244_v39  ;;  %275 = vmatpush.msra.mxu0 %v211_v44  ;;  %v235_v63 = vld [vmem:[%s831_s5 + $0x110] sm:$0xff]  ;;  %v233_v1 = vld [vmem:[%s831_s5 + $0x100] sm:$0xff] }
  0x3d   : > { %316 = vmatpush.msra.mxu2 %v210_v42  ;;  %295 = vmatpush.msra.mxu1 %v243_v45 }
  0x3e   : > { %336 = vmatpush.msra.mxu3 %v242_v43  ;;  %276 = vmatpush.msra.mxu0 %v209_v48 }
  0x3f   : > { %317 = vmatpush.msra.mxu2 %v208_v46  ;;  %296 = vmatpush.msra.mxu1 %v241_v49 }
  0x40   : > { %337 = vmatpush.msra.mxu3 %v240_v47  ;;  %277 = vmatpush.msra.mxu0 %v207_v52 }
  0x41   : > { %318 = vmatpush.msra.mxu2 %v206_v50  ;;  %297 = vmatpush.msra.mxu1 %v239_v53 }
  0x42   : > { %338 = vmatpush.msra.mxu3 %v238_v51  ;;  %278 = vmatpush.msra.mxu0 %v205_v56 }
  0x43   : > { %319 = vmatpush.msra.mxu2 %v204_v54  ;;  %298 = vmatpush.msra.mxu1 %v237_v57 }
  0x44   : > { %339 = vmatpush.msra.mxu3 %v236_v55  ;;  %279 = vmatpush.msra.mxu0 %v203_v62 }
  0x45   : > { %320 = vmatpush.msra.mxu2 %v202_v58  ;;  %299 = vmatpush.msra.mxu1 %v235_v63 }
  0x46   : > { %340 = vmatpush.msra.mxu3 %v234_v59  ;;  %321 = vmatmul.f32.vlgmr.msra.gmra.mxu2 %v199_v60 }
  0x47   : > { %341 = vmatmul.f32.vlgmr.msra.gmra.mxu3 %v200_v61  ;;  %280 = vmatpush.msra.mxu0 %v201_v0 }
  0x48   : > { %300 = vmatpush.msra.mxu1 %v233_v1  ;;  %281 = vmatmul.f32.vlgmr.msra.gmra.mxu0 %v199_v60 }
  0x49   : > { %301 = vmatmul.f32.vlgmr.msra.gmra.mxu1 %v200_v61 }
  0xc5   : > { %v282_v2 = vpop.f32.mrf.mxu0 }
  0xc6   : > { %v302_v3 = vpop.f32.mrf.mxu1 }
  0xc7   : > { %v303_v4 = vadd.f32 %v302_v3, %v282_v2 }
  0xc9   : > { %v322_v5 = vpop.f32.mrf.mxu2  ;;  %345 = vst [vmem:[%s196_s7] sm:$0xff] %v303_v4 }
  0xca   : > { %v342_v6 = vpop.f32.mrf.mxu3 }
  0xcb   : > { %v343_v7 = vadd.f32 %v342_v6, %v322_v5 }
  0xcd   : > { %346 = vst [vmem:[%s196_s7 + $0x8] sm:$0xff] %v343_v7 }
  0xce   : > { %643 = shalt.err (!%p640_p1)
}
  0xcf   : > { %487 = dma.vmem_to_hbm [thread:$0]  (%p774_p8), %s364_s8, 256, %s366_s15, %s348_s16  }
  0xd0 PF: > { %s377_s17 = sand.u32 1, %s682_s9   ;;  %p498_p2 = pnand %p466_p13, %p778_p9 }
  0xd1   : > { %s378_s4 = scalar_lea.sflag [#allocation4], %s377_s17 }
  0xd2   : > { %p499_p4 = pneg %p498_p2 }
  0xd4   : > { %677 = dma.done.wait (%p499_p4), %s378_s4, 256  }
  0xd5   : > { %679 = vsyncadd (%p499_p4), %s378_s4, 4294967040  ;;  %s19_s14 = sadd.s32 1, %s702_s14   ;;  %s950_s9 = smov %s686_s10 }
  0xd6   : > { %p16_p6 = scmp.ge.s32.totalorder %s19_s14, 4   ;;  %s951_s10 = smov %s690_s11 }
  0xd7   : > { %s952_s11 = smov %s816_s23  ;;  %s953_s12 = smov %s698_s13 }
  0xd8   : > { %s954_s13 = smov %s956_s30  ;;  %18 = sbr.rel (!%p16_p6) target bundleno = 7 (0x7), region = 78 }
  0xdd   :  { %384 = vsyncpa [#allocation3], 1 }
  0xde   :  { %386 = vsyncpa [#allocation3 + $0x1], 1 }
  0xdf   :  { %387 = vsyncpa [#allocation6], 1 }
  0xe0   :  { %389 = vsyncpa [#allocation6 + $0x1], 1 }
  0xe1   :  { %390 = vsyncpa [#allocation4], 1 }
  0xe2   :  { %392 = vsyncpa [#allocation4 + $0x1], 1 }

</bundles_post_ra>
